<compile_context>
chip_gen: v5e
topology: v5e:2x2
jax: 0.10.0
libtpu: 0.0.40
codegen_flags: <defaults>
</compile_context>

<pallas_src>
import jax
import jax.numpy as jnp
from jax.experimental import pallas as pl
from jax.experimental.pallas import tpu as pltpu

# Lane-padded layer sizes: 64 -> 256 -> 128 -> 128 -> 1.
_D_IN, _H1, _H2, _H3 = 64, 256, 128, 128


def _mlp_kernel(x_ref, w1_ref, b1_ref, w2_ref, b2_ref, w3_ref, b3_ref,
                w4_ref, b4_ref, o_ref):
    # x_ref: (TB, 64) bf16 tile; weights bf16 (VMEM-resident); biases f32.
    # MXU matmuls accumulate in f32; bias-add/ReLU run on the VPU in f32.
    h = jnp.dot(x_ref[...], w1_ref[...], preferred_element_type=jnp.float32)
    h = jnp.maximum(h + b1_ref[...], 0.0)                        # (TB, 256)
    h = jnp.dot(h.astype(jnp.bfloat16), w2_ref[...],
                preferred_element_type=jnp.float32)
    h = jnp.maximum(h + b2_ref[...], 0.0)                        # (TB, 128)
    h = jnp.dot(h.astype(jnp.bfloat16), w3_ref[...],
                preferred_element_type=jnp.float32)
    h = jnp.maximum(h + b3_ref[...], 0.0)                        # (TB, 128)
    # Layer 4 (20 -> 1): contract the lane axis of h against the padded (1, 128)
    # weight row -> lane-dense (1, TB) result (avoids masked vst on a [TB, 1] store).
    out = jax.lax.dot_general(
        w4_ref[...], h.astype(jnp.bfloat16),
        dimension_numbers=(((1,), (1,)), ((), ())),
        preferred_element_type=jnp.float32)                      # (1, TB)
    o_ref[...] = out + b4_ref[...]


def regressor_forward(x, packed_params, *, block_b=512):
    """x: [B, 64] float32 -> [B, 1] float32 (eval-mode forward)."""
    B, d_in = x.shape
    assert d_in == _D_IN, x.shape
    w1, b1, w2, b2, w3, b3, w4, b4 = packed_params

    # Batch tile: multiple of 8 sublanes; capped so VMEM use stays tiny even on
    # v7x (64 MiB physical / 32 MiB scoped default) -> no vmem_limit override needed.
    if B >= block_b:
        tb = block_b
    else:
        tb = max(8, ((B + 7) // 8) * 8)
    num_tiles = pl.cdiv(B, tb)
    bp = num_tiles * tb

    x = x.astype(jnp.bfloat16)
    if bp != B:
        x = jnp.pad(x, ((0, bp - B), (0, 0)))

    n_w = _D_IN * _H1 + _H1 * _H2 + _H2 * _H3 + _H3
    cost = pl.CostEstimate(
        flops=2 * bp * n_w,
        transcendentals=0,
        bytes_accessed=bp * _D_IN * 2 + bp * 4 + 2 * n_w
        + 4 * (_H1 + _H2 + _H3 + 1),
    )

    def resident(arr):  # whole array, same block every grid step -> stays in VMEM
        return pl.BlockSpec(arr.shape, lambda i: (0, 0))

    out_flat = pl.pallas_call(
        _mlp_kernel,
        out_shape=jax.ShapeDtypeStruct((1, bp), jnp.float32),
        grid=(num_tiles,),
        in_specs=[
            pl.BlockSpec((tb, _D_IN), lambda i: (i, 0)),   # x streamed per batch tile
            resident(w1), resident(b1),
            resident(w2), resident(b2),
            resident(w3), resident(b3),
            resident(w4), resident(b4),
        ],
        out_specs=pl.BlockSpec((1, tb), lambda i: (0, i)),  # lane-dense output slab
        compiler_params=pltpu.CompilerParams(
            dimension_semantics=("parallel",)),             # megacore split on v7x
        cost_estimate=cost,
    )(x, w1, b1, w2, b2, w3, b3, w4, b4)

    return out_flat[0, :B].reshape(B, 1)


def init_params(key):
    """PyTorch nn.Linear-style init (U[-1/sqrt(in), 1/sqrt(in)]).
    Weights stored as [in, out] (transposed vs torch), biases as [out]."""
    dims = [(64, 200), (200, 100), (100, 20), (20, 1)]
    params = []
    for fin, fout in dims:
        key, kw, kb = jax.random.split(key, 3)
        bound = 1.0 / jnp.sqrt(jnp.float32(fin))
        w = jax.random.uniform(kw, (fin, fout), jnp.float32, -bound, bound)
        b = jax.random.uniform(kb, (fout,), jnp.float32, -bound, bound)
        params += [w, b]
    return tuple(params)


def pack_params(params):
    """Zero-pad hidden dims to lane multiples, cast weights to bf16 (biases stay f32),
    and store the 20->1 head as a padded (1, 128) row for a lane-dense output."""
    w1, b1, w2, b2, w3, b3, w4, b4 = params

    def pad2(a, rows, cols):
        return jnp.pad(a, ((0, rows - a.shape[0]), (0, cols - a.shape[1])))

    w1p = pad2(w1, _D_IN, _H1).astype(jnp.bfloat16)
    b1p = jnp.pad(b1, (0, _H1 - b1.shape[0])).reshape(1, _H1).astype(jnp.float32)
    w2p = pad2(w2, _H1, _H2).astype(jnp.bfloat16)
    b2p = jnp.pad(b2, (0, _H2 - b2.shape[0])).reshape(1, _H2).astype(jnp.float32)
    w3p = pad2(w3, _H2, _H3).astype(jnp.bfloat16)
    b3p = jnp.pad(b3, (0, _H3 - b3.shape[0])).reshape(1, _H3).astype(jnp.float32)
    w4p = jnp.pad(w4, ((0, _H3 - w4.shape[0]), (0, 0))).T.astype(jnp.bfloat16)  # (1, 128)
    b4p = b4.reshape(1, 1).astype(jnp.float32)
    return (w1p, b1p, w2p, b2p, w3p, b3p, w4p, b4p)


def _reference_forward(x, params):
    """Pure-JAX reference with matching bf16-input / f32-accumulate numerics."""
    w1, b1, w2, b2, w3, b3, w4, b4 = params
    bf = lambda a: a.astype(jnp.bfloat16)
    dot = lambda a, b: jnp.dot(bf(a), bf(b), preferred_element_type=jnp.float32)
    h = jnp.maximum(dot(x, w1) + b1, 0.0)
    h = jnp.maximum(dot(h, w2) + b2, 0.0)
    h = jnp.maximum(dot(h, w3) + b3, 0.0)
    return dot(h, w4) + b4


if __name__ == "__main__":
    key = jax.random.PRNGKey(0)
    key, kx = jax.random.split(key)
    params = init_params(key)
    packed = pack_params(params)

    # Primary check: small demo batch (single grid step).
    B = 8
    x = jax.random.normal(kx, (B, 64), jnp.float32)
    out = jax.block_until_ready(regressor_forward(x, packed))
    ref = _reference_forward(x, params)
    assert out.shape == (B, 1), out.shape
    max_err = float(jnp.max(jnp.abs(out - ref)))
    assert jnp.allclose(out, ref, atol=1e-2, rtol=1e-2), f"mismatch vs reference: {max_err}"

    # Secondary check: exercise the multi-tile streaming path (grid > 1 + batch padding).
    key, kx2 = jax.random.split(key)
    B2 = 300
    x2 = jax.random.normal(kx2, (B2, 64), jnp.float32)
    out2 = jax.block_until_ready(regressor_forward(x2, packed, block_b=128))
    ref2 = _reference_forward(x2, params)
    assert out2.shape == (B2, 1), out2.shape
    max_err2 = float(jnp.max(jnp.abs(out2 - ref2)))
    assert jnp.allclose(out2, ref2, atol=1e-2, rtol=1e-2), f"mismatch (tiled): {max_err2}"

    print("KERNEL_OK")
</pallas_src>

<mosaic_0001>
module attributes {stable_mosaic.version = 11 : i64} {
  func.func @_mlp_kernel(%arg0: i32, %arg1: memref<8x64xbf16, #tpu.memory_space<vmem>>, %arg2: memref<64x256xbf16, #tpu.memory_space<vmem>>, %arg3: memref<1x256xf32, #tpu.memory_space<vmem>>, %arg4: memref<256x128xbf16, #tpu.memory_space<vmem>>, %arg5: memref<1x128xf32, #tpu.memory_space<vmem>>, %arg6: memref<128x128xbf16, #tpu.memory_space<vmem>>, %arg7: memref<1x128xf32, #tpu.memory_space<vmem>>, %arg8: memref<1x128xbf16, #tpu.memory_space<vmem>>, %arg9: memref<1x1xf32, #tpu.memory_space<vmem>>, %arg10: memref<1x8xf32, #tpu.memory_space<vmem>>) attributes {dimension_semantics = [#tpu.dimension_semantics<parallel>], iteration_bounds = array<i64: 1>, scalar_prefetch = 0 : i64, scratch_operands = 0 : i64, tpu.core_type = #tpu.core_type<tc>, window_params = [{transform_indices = @transform_0, window_bounds = array<i64: 8, 64>}, {pipeline_mode = #tpu.pipeline_mode<synchronous>, transform_indices = @transform_1, window_bounds = array<i64: 64, 256>}, {pipeline_mode = #tpu.pipeline_mode<synchronous>, transform_indices = @transform_2, window_bounds = array<i64: 1, 256>}, {pipeline_mode = #tpu.pipeline_mode<synchronous>, transform_indices = @transform_3, window_bounds = array<i64: 256, 128>}, {pipeline_mode = #tpu.pipeline_mode<synchronous>, transform_indices = @transform_4, window_bounds = array<i64: 1, 128>}, {pipeline_mode = #tpu.pipeline_mode<synchronous>, transform_indices = @transform_5, window_bounds = array<i64: 128, 128>}, {pipeline_mode = #tpu.pipeline_mode<synchronous>, transform_indices = @transform_6, window_bounds = array<i64: 1, 128>}, {pipeline_mode = #tpu.pipeline_mode<synchronous>, transform_indices = @transform_7, window_bounds = array<i64: 1, 128>}, {pipeline_mode = #tpu.pipeline_mode<synchronous>, transform_indices = @transform_8, window_bounds = array<i64: 1, 1>}, {transform_indices = @transform_9, window_bounds = array<i64: 1, 8>}]} {
    %c0 = arith.constant 0 : index
    %c0_0 = arith.constant 0 : index
    %0 = vector.load %arg1[%c0, %c0_0] : memref<8x64xbf16, #tpu.memory_space<vmem>>, vector<8x64xbf16>
    %c0_1 = arith.constant 0 : index
    %c0_2 = arith.constant 0 : index
    %1 = vector.load %arg2[%c0_1, %c0_2] : memref<64x256xbf16, #tpu.memory_space<vmem>>, vector<64x256xbf16>
    %cst = arith.constant dense<0.000000e+00> : vector<8x256xf32>
    %2 = tpu.matmul %0, %1, %cst {dimension_numbers = #tpu.dot_dimension_numbers<[1], [0], [0], [1], [0, 0, 1, 1], [], []>} : vector<8x64xbf16>, vector<64x256xbf16>, vector<8x256xf32> -> vector<8x256xf32>
    %c0_3 = arith.constant 0 : index
    %c0_4 = arith.constant 0 : index
    %3 = vector.load %arg3[%c0_3, %c0_4] : memref<1x256xf32, #tpu.memory_space<vmem>>, vector<1x256xf32>
    %4 = vector.broadcast %3 : vector<1x256xf32> to vector<8x256xf32>
    %5 = arith.addf %2, %4 : vector<8x256xf32>
    %cst_5 = arith.constant 0.000000e+00 : f32
    %6 = vector.broadcast %cst_5 : f32 to vector<8x256xf32>
    %7 = arith.maximumf %5, %6 : vector<8x256xf32>
    %8 = arith.truncf %7 : vector<8x256xf32> to vector<8x256xbf16>
    %c0_6 = arith.constant 0 : index
    %c0_7 = arith.constant 0 : index
    %9 = vector.load %arg4[%c0_6, %c0_7] : memref<256x128xbf16, #tpu.memory_space<vmem>>, vector<256x128xbf16>
    %cst_8 = arith.constant dense<0.000000e+00> : vector<8x128xf32>
    %10 = tpu.matmul %8, %9, %cst_8 {dimension_numbers = #tpu.dot_dimension_numbers<[1], [0], [0], [1], [0, 0, 1, 1], [], []>} : vector<8x256xbf16>, vector<256x128xbf16>, vector<8x128xf32> -> vector<8x128xf32>
    %c0_9 = arith.constant 0 : index
    %c0_10 = arith.constant 0 : index
    %11 = vector.load %arg5[%c0_9, %c0_10] : memref<1x128xf32, #tpu.memory_space<vmem>>, vector<1x128xf32>
    %12 = vector.broadcast %11 : vector<1x128xf32> to vector<8x128xf32>
    %13 = arith.addf %10, %12 : vector<8x128xf32>
    %cst_11 = arith.constant 0.000000e+00 : f32
    %14 = vector.broadcast %cst_11 : f32 to vector<8x128xf32>
    %15 = arith.maximumf %13, %14 : vector<8x128xf32>
    %16 = arith.truncf %15 : vector<8x128xf32> to vector<8x128xbf16>
    %c0_12 = arith.constant 0 : index
    %c0_13 = arith.constant 0 : index
    %17 = vector.load %arg6[%c0_12, %c0_13] : memref<128x128xbf16, #tpu.memory_space<vmem>>, vector<128x128xbf16>
    %cst_14 = arith.constant dense<0.000000e+00> : vector<8x128xf32>
    %18 = tpu.matmul %16, %17, %cst_14 {dimension_numbers = #tpu.dot_dimension_numbers<[1], [0], [0], [1], [0, 0, 1, 1], [], []>} : vector<8x128xbf16>, vector<128x128xbf16>, vector<8x128xf32> -> vector<8x128xf32>
    %c0_15 = arith.constant 0 : index
    %c0_16 = arith.constant 0 : index
    %19 = vector.load %arg7[%c0_15, %c0_16] : memref<1x128xf32, #tpu.memory_space<vmem>>, vector<1x128xf32>
    %20 = vector.broadcast %19 : vector<1x128xf32> to vector<8x128xf32>
    %21 = arith.addf %18, %20 : vector<8x128xf32>
    %cst_17 = arith.constant 0.000000e+00 : f32
    %22 = vector.broadcast %cst_17 : f32 to vector<8x128xf32>
    %23 = arith.maximumf %21, %22 : vector<8x128xf32>
    %c0_18 = arith.constant 0 : index
    %c0_19 = arith.constant 0 : index
    %24 = vector.load %arg8[%c0_18, %c0_19] : memref<1x128xbf16, #tpu.memory_space<vmem>>, vector<1x128xbf16>
    %25 = arith.truncf %23 : vector<8x128xf32> to vector<8x128xbf16>
    %cst_20 = arith.constant dense<0.000000e+00> : vector<1x8xf32>
    %26 = tpu.matmul %24, %25, %cst_20 {dimension_numbers = #tpu.dot_dimension_numbers<[1], [1], [0], [0], [0, 0, 1, 0], [], []>} : vector<1x128xbf16>, vector<8x128xbf16>, vector<1x8xf32> -> vector<1x8xf32>
    %c0_21 = arith.constant 0 : index
    %c0_22 = arith.constant 0 : index
    %27 = vector.load %arg9[%c0_21, %c0_22] : memref<1x1xf32, #tpu.memory_space<vmem>>, vector<1x1xf32>
    %28 = vector.broadcast %27 : vector<1x1xf32> to vector<1x8xf32>
    %29 = arith.addf %26, %28 : vector<1x8xf32>
    %c0_23 = arith.constant 0 : index
    %c0_24 = arith.constant 0 : index
    %30 = vector.load %arg10[%c0_23, %c0_24] : memref<1x8xf32, #tpu.memory_space<vmem>>, vector<1x8xf32>
    tpu.vector_store %arg10[%c0_23, %c0_24], %29 {strides = array<i32>} : memref<1x8xf32, #tpu.memory_space<vmem>>, vector<1x8xf32>,
    return
  }
  func.func @transform_0(%arg0: i32) -> (i32, i32) {
    %c0_i32 = arith.constant 0 : i32
    %c0_i32_0 = arith.constant 0 : i32
    return %arg0, %c0_i32 : i32, i32
  }
  func.func @transform_1(%arg0: i32) -> (i32, i32) {
    %c0_i32 = arith.constant 0 : i32
    %c0_i32_0 = arith.constant 0 : i32
    %c0_i32_1 = arith.constant 0 : i32
    return %c0_i32, %c0_i32_0 : i32, i32
  }
  func.func @transform_2(%arg0: i32) -> (i32, i32) {
    %c0_i32 = arith.constant 0 : i32
    %c0_i32_0 = arith.constant 0 : i32
    %c0_i32_1 = arith.constant 0 : i32
    return %c0_i32, %c0_i32_0 : i32, i32
  }
  func.func @transform_3(%arg0: i32) -> (i32, i32) {
    %c0_i32 = arith.constant 0 : i32
    %c0_i32_0 = arith.constant 0 : i32
    %c0_i32_1 = arith.constant 0 : i32
    return %c0_i32, %c0_i32_0 : i32, i32
  }
  func.func @transform_4(%arg0: i32) -> (i32, i32) {
    %c0_i32 = arith.constant 0 : i32
    %c0_i32_0 = arith.constant 0 : i32
    %c0_i32_1 = arith.constant 0 : i32
    return %c0_i32, %c0_i32_0 : i32, i32
  }
  func.func @transform_5(%arg0: i32) -> (i32, i32) {
    %c0_i32 = arith.constant 0 : i32
    %c0_i32_0 = arith.constant 0 : i32
    %c0_i32_1 = arith.constant 0 : i32
    return %c0_i32, %c0_i32_0 : i32, i32
  }
  func.func @transform_6(%arg0: i32) -> (i32, i32) {
    %c0_i32 = arith.constant 0 : i32
    %c0_i32_0 = arith.constant 0 : i32
    %c0_i32_1 = arith.constant 0 : i32
    return %c0_i32, %c0_i32_0 : i32, i32
  }
  func.func @transform_7(%arg0: i32) -> (i32, i32) {
    %c0_i32 = arith.constant 0 : i32
    %c0_i32_0 = arith.constant 0 : i32
    %c0_i32_1 = arith.constant 0 : i32
    return %c0_i32, %c0_i32_0 : i32, i32
  }
  func.func @transform_8(%arg0: i32) -> (i32, i32) {
    %c0_i32 = arith.constant 0 : i32
    %c0_i32_0 = arith.constant 0 : i32
    %c0_i32_1 = arith.constant 0 : i32
    return %c0_i32, %c0_i32_0 : i32, i32
  }
  func.func @transform_9(%arg0: i32) -> (i32, i32) {
    %c0_i32 = arith.constant 0 : i32
    %c0_i32_0 = arith.constant 0 : i32
    return %c0_i32, %arg0 : i32, i32
  }
}

</mosaic_0001>

<bundles_post_ra>
// kernel: tpu_custom_call.1
= control target key start
LH: loop header
LB: loop body
LE: loop exit
PB: predicated region body
PF: predicated region fallthrough
CT: control target
= control target key end

     0   :  { %s864_s0 = inlined_call_operand.hbm [shape: bf16[8,64], index: 0, kind: input, shape index: {}]   ;;  %s865_s1 = inlined_call_operand.hbm [shape: bf16[64,256], index: 1, kind: input, shape index: {}]   ;;  %s866_s2 = inlined_call_operand.vmem [shape: f32[1,256], index: 2, kind: input, shape index: {}]   ;;  %s867_s3 = inlined_call_operand.hbm [shape: bf16[256,128], index: 3, kind: input, shape index: {}]   ;;  %s868_s4 = inlined_call_operand.vmem [shape: f32[1,128], index: 4, kind: input, shape index: {}]   ;;  %s869_s5 = inlined_call_operand.hbm [shape: bf16[128,128], index: 5, kind: input, shape index: {}]   ;;  %s870_s6 = inlined_call_operand.vmem [shape: f32[1,128], index: 6, kind: input, shape index: {}]   ;;  %s871_s7 = inlined_call_operand.vmem [shape: bf16[1,128], index: 7, kind: input, shape index: {}]   ;;  %s872_s8 = inlined_call_operand.<no memory space> [shape: f32[1,1], index: 8, kind: input, shape index: {}]   ;;  %s873_s9 = inlined_call_operand.hbm [shape: f32[1,8], index: 9, kind: output, shape index: {}]  }
   0x1   :  { %v14_v0 = vstv %s872_s8 }
   0x2   :  { %15 = vst [vmem:[#allocation2] sm:$0x1] %v14_v0 }
   0x3   :  { %16 = vsyncpa [#allocation4], 0 }
   0x4   :  { %17 = vsyncpa [#allocation7], 0 }
   0x5   :  { %18 = vsyncpa [#allocation10], 0  ;;  %s35_s13 = sshll.u32 %s865_s1, 4  ;;  %s36_s13 = int_to_ptr.hbm [resolvable:$true] %s35_s13 }
   0x6   :  { %19 = vsyncpa [#allocation5], 0  ;;  %s774_s14 = smov [#allocation6]   ;;  %s25_s18 = sshll.u32 %s864_s0, 4  ;;  %s26_s18 = int_to_ptr.hbm [resolvable:$true] %s25_s18 }
   0x7   :  { %s37_s15 = sshll.u32 %s774_s14, 4  ;;  %s775_s19 = smov 128   ;;  %s38_s15 = int_to_ptr.vmem [resolvable:$true] %s37_s15 }
   0x8   :  { %s776_s20 = smov 8   ;;  %s777_s8 = smov [#allocation3]  }
   0x9   :  { %43 = dma.hbm_to_vmem [thread:$0]  %s36_s13, 1024, %s38_s15, [#allocation7], %s775_s19, %s775_s19, %s776_s20  }
   0xa   :  { %s27_s21 = sshll.u32 %s777_s8, 4  ;;  %s50_s24 = sshll.u32 %s867_s3, 4  ;;  %s28_s21 = int_to_ptr.vmem [resolvable:$true] %s27_s21  ;;  %s51_s24 = int_to_ptr.hbm [resolvable:$true] %s50_s24 }
   0xb   :  { %30 = dma.hbm_to_vmem [thread:$0]  %s26_s18, 64, %s28_s21, [#allocation4]  }
   0xc   :  { %s778_s1 = smov [#allocation8]   ;;  %s65_s0 = sshll.u32 %s869_s5, 4  ;;  %s66_s0 = int_to_ptr.hbm [resolvable:$true] %s65_s0 }
   0xd   :  { %s52_s25 = sshll.u32 %s778_s1, 4  ;;  %s779_s28 = smov 64   ;;  %s53_s25 = int_to_ptr.vmem [resolvable:$true] %s52_s25 }
   0xe   :  { %s780_s29 = smov 4   ;;  %s781_s30 = smov [#allocation9]  }
   0xf   :  { %58 = dma.hbm_to_vmem [thread:$0]  %s51_s24, 2048, %s53_s25, [#allocation7], %s779_s28, %s779_s28, %s780_s29  }
  0x10   :  { %s67_s10 = sshll.u32 %s781_s30, 4  ;;  %s68_s10 = int_to_ptr.vmem [resolvable:$true] %s67_s10 }
  0x11   :  { %73 = dma.hbm_to_vmem [thread:$0]  %s66_s0, 1024, %s68_s10, [#allocation10], %s779_s28, %s779_s28, %s780_s29  }
  0x12   :  { %766 = dma.done.wait [#allocation4], 64  }
  0x13   :  { %767 = vsyncadd [#allocation4], 4294967232 }
  0x14   :  { %768 = dma.done.wait [#allocation7], 3072  }
  0x15   :  { %769 = vsyncadd [#allocation7], 4294964224 }
  0x16   :  { %770 = dma.done.wait [#allocation10], 1024  }
  0x17   :  { %771 = vsyncadd [#allocation10], 4294966272  ;;  %v497_v1 = vld [vmem:[#allocation6 + $0x30] sm:$0xf]  ;;  %v608_v2 = vld [vmem:[#allocation6 + $0x34] sm:$0xf0] }
  0x18   :  { %v607_v3 = vld [vmem:[#allocation6 + $0x34] sm:$0xf]  ;;  %v498_v4 = vor.u32 %v608_v2, %v497_v1  ;;  %v499_v5 = vld [vmem:[#allocation6 + $0x38] sm:$0xf0]  ;;  %v489_v6 = vld [vmem:[#allocation6 + $0x20] sm:$0xf] }
  0x19   :  { %v606_v7 = vld [vmem:[#allocation6 + $0x24] sm:$0xf0]  ;;  %v502_v8 = vor.u32 %v607_v3, %v499_v5  ;;  %v605_v9 = vld [vmem:[#allocation6 + $0x24] sm:$0xf]  ;;  %v491_v10 = vld [vmem:[#allocation6 + $0x28] sm:$0xf0] }
  0x1a   :  { %160 = vmatpush.bf16.msra.mxu0 %v498_v4  ;;  %v490_v11 = vor.u32 %v606_v7, %v489_v6  ;;  %v494_v12 = vor.u32 %v605_v9, %v491_v10  ;;  %v481_v13 = vld [vmem:[#allocation6 + $0x10] sm:$0xf]  ;;  %v604_v14 = vld [vmem:[#allocation6 + $0x14] sm:$0xf0]  ;;  %v603_v15 = vld [vmem:[#allocation6 + $0x14] sm:$0xf] }
  0x1b   :  { %173 = vmatpush.bf16.msra.mxu1 %v502_v8  ;;  %v483_v16 = vld [vmem:[#allocation6 + $0x18] sm:$0xf0]  ;;  %v482_v19 = vor.u32 %v604_v14, %v481_v13  ;;  %v615_v20 = vld [vmem:[#allocation8 + $0x30] sm:$0xff]  ;;  %v473_v22 = vld [vmem:[#allocation6] sm:$0xf]  ;;  %vm152_vm0 = vcmask 523264  }
  0x1c   :  { %v616_v17 = vld [vmem:[#allocation8 + $0x38] sm:$0xff]  ;;  %v486_v21 = vor.u32 %v603_v15, %v483_v16  ;;  %v602_v23 = vld [vmem:[#allocation6 + $0x4] sm:$0xf0]  ;;  %v623_v24 = vld [vmem:[#allocation8 + $0x70] sm:$0xff]  ;;  %v782_v9 = vmov 0   ;;  %s783_s15 = smov [#allocation11]  }
  0x1d   :  { %v624_v18 = vld [vmem:[#allocation8 + $0x78] sm:$0xff]  ;;  %318 = vmatpush.bf16.msra.mxu2 %v616_v17  ;;  %v601_v25 = vld [vmem:[#allocation6 + $0x4] sm:$0xf]  ;;  %v475_v26 = vld [vmem:[#allocation6 + $0x8] sm:$0xf0]  ;;  %v474_v27 = vor.u32 %v602_v23, %v473_v22  ;;  %643 = vset.pattern.permute.xlu0 %v782_v9  ;;  %s457_s16 = sshll.u32 %s783_s15, 4  ;;  %s458_s16 = int_to_ptr.vmem [resolvable:$true] %s457_s16 }
  0x1e   :  { %161 = vmatpush.bf16.msra.mxu0 %v490_v11  ;;  %331 = vmatpush.bf16.msra.mxu3 %v624_v18  ;;  %v614_v28 = vld [vmem:[#allocation8 + $0x28] sm:$0xff]  ;;  %v478_v29 = vor.u32 %v601_v25, %v475_v26  ;;  %v97_v31 = vld [vmem:[#allocation3] sm:$0xf]  ;;  %v613_v32 = vld [vmem:[#allocation8 + $0x20] sm:$0xff]  ;;  %s459_s19 = sshll.u32 %s873_s9, 4  ;;  %vm450_vm1 = vcmask 57344   ;;  %s460_s19 = int_to_ptr.hbm [resolvable:$true] %s459_s19 }
  0x1f   :  { %174 = vmatpush.bf16.msra.mxu1 %v494_v12  ;;  %v622_v30 = vld [vmem:[#allocation8 + $0x68] sm:$0xff]  ;;  %v621_v33 = vld [vmem:[#allocation8 + $0x60] sm:$0xff]  ;;  %v612_v34 = vld [vmem:[#allocation8 + $0x18] sm:$0xff] }
  0x20   :  { %v620_v35 = vld [vmem:[#allocation8 + $0x58] sm:$0xff]  ;;  %v611_v36 = vld [vmem:[#allocation8 + $0x10] sm:$0xff]  ;;  %v610_v38 = vld [vmem:[#allocation8 + $0x8] sm:$0xff] }
  0x21   :  { %319 = vmatpush.bf16.msra.mxu2 %v615_v20  ;;  %v619_v37 = vld [vmem:[#allocation8 + $0x50] sm:$0xff]  ;;  %v618_v39 = vld [vmem:[#allocation8 + $0x48] sm:$0xff]  ;;  %v609_v40 = vld [vmem:[#allocation8] sm:$0xff] }
  0x22   :  { %162 = vmatpush.bf16.msra.mxu0 %v482_v19  ;;  %332 = vmatpush.bf16.msra.mxu3 %v623_v24  ;;  %v617_v41 = vld [vmem:[#allocation8 + $0x40] sm:$0xff]  ;;  %v632_v42 = vld [vmem:[#allocation9 + $0x38] sm:$0xff]  ;;  %v631_v43 = vld [vmem:[#allocation9 + $0x30] sm:$0xff] }
  0x23   :  { %175 = vmatpush.bf16.msra.mxu1 %v486_v21  ;;  %v630_v44 = vld [vmem:[#allocation9 + $0x28] sm:$0xff]  ;;  %v629_v45 = vld [vmem:[#allocation9 + $0x20] sm:$0xff]  ;;  %v628_v46 = vld [vmem:[#allocation9 + $0x18] sm:$0xff] }
  0x24   :  { %v106_v47 = vld [vmem:[%s866_s2] sm:$0x3]  ;;  %v627_v48 = vld [vmem:[#allocation9 + $0x10] sm:$0xff]  ;;  %v626_v61 = vld [vmem:[#allocation9 + $0x8] sm:$0xff] }
  0x25   :  { %320 = vmatpush.bf16.msra.mxu2 %v614_v28  ;;  %v108_v49 = vperm.slane %v106_v47, 0  ;;  %v109_v50 = vperm.slane %v106_v47, 1  ;;  %v625_v62 = vld [vmem:[#allocation9] sm:$0xff]  ;;  %v644_v63 = vld [vmem:[%s868_s4] ss:$0 sm:$0xff] }
  0x26   :  { %163 = vmatpush.bf16.msra.mxu0 %v474_v27  ;;  %333 = vmatpush.bf16.msra.mxu3 %v622_v30  ;;  %v430_v8 = vld [vmem:[#allocation2] sm:$0x1] }
  0x27   :  { %176 = vmatpush.bf16.msra.mxu1 %v478_v29  ;;  %433 = vperm.xlu0 %643, %v430_v8   ;;  %v645_v10 = vld [vmem:[%s870_s6] ss:$0 sm:$0xff] }
  0x28   :  { %v428_v16 = vld [vmem:[%s871_s7] sm:$0x1] }
  0x29   :  { %503 = vmatmul.msk.bf16.vlgmr.msra.gmra.mxu0 %vm152_vm0, %v97_v31  ;;  %321 = vmatpush.bf16.msra.mxu2 %v613_v32 }
  0x2a   :  { %504 = vmatmul.msk.bf16.vlgmr.msra.gmra.mxu1 %vm152_vm0, %v97_v31  ;;  %334 = vmatpush.bf16.msra.mxu3 %v621_v33 }
  0x2b   :  { %414 = vmatpush.bf16.msrb.mxu0 %v632_v42 }
  0x2d   :  { %322 = vmatpush.bf16.msra.mxu2 %v612_v34 }
  0x2e   :  { %335 = vmatpush.bf16.msra.mxu3 %v620_v35 }
  0x2f   :  { %415 = vmatpush.bf16.msrb.mxu0 %v631_v43 }
  0x31   :  { %323 = vmatpush.bf16.msra.mxu2 %v611_v36 }
  0x32   :  { %336 = vmatpush.bf16.msra.mxu3 %v619_v37 }
  0x33   :  { %416 = vmatpush.bf16.msrb.mxu0 %v630_v44 }
  0x35   :  { %324 = vmatpush.bf16.msra.mxu2 %v610_v38 }
  0x36   :  { %337 = vmatpush.bf16.msra.mxu3 %v618_v39 }
  0x37   :  { %417 = vmatpush.bf16.msrb.mxu0 %v629_v45 }
  0x39   :  { %325 = vmatpush.bf16.msra.mxu2 %v609_v40 }
  0x3a   :  { %338 = vmatpush.bf16.msra.mxu3 %v617_v41 }
  0x3b   :  { %418 = vmatpush.bf16.msrb.mxu0 %v628_v46 }
  0x3f   :  { %419 = vmatpush.bf16.msrb.mxu0 %v627_v48 }
  0x43   :  { %420 = vmatpush.bf16.msrb.mxu0 %v626_v61 }
  0x47   :  { %421 = vmatpush.bf16.msrb.mxu0 %v625_v62 }
  0x99   :  { %v434_v17 = vpop.permute.xlu0 %433 }
  0x9a   :  { %v436_v18 = vperm.slane %v434_v17, 0 }
  0xa6   :  { %v165_v51 = vpop.f32.mrf.mxu0 }
  0xa7   :  { %v166_v52 = vadd.f32 %v165_v51, %v108_v49  ;;  %v178_v53 = vpop.f32.mrf.mxu1 }
  0xa8   :  { %v179_v54 = vadd.f32 %v178_v53, %v109_v50 }
  0xa9   :  { %v182_v55 = vmax.f32 %v166_v52, 0.0 }
  0xaa   :  { %v183_v56 = vmax.f32 %v179_v54, 0.0 }
  0xab   :  { %v184_v57 = vpack.c.bf16 %v182_v55, %v182_v55 }
  0xac   :  { %v185_v58 = vpack.c.bf16 %v183_v56, %v183_v56 }
  0xad   :  { %326 = vmatmul.bf16.vlgmr.msra.gmra.mxu2 %v184_v57 }
  0xae   :  { %339 = vmatmul.bf16.vlgmr.msra.gmra.mxu3 %v185_v58  ;;  %v167_v59 = vpop.f32.mrf.mxu0 }
  0xaf   :  { %v180_v60 = vpop.f32.mrf.mxu1 }
 0x130   :  { %v327_v0 = vpop.f32.mrf.mxu2 }
 0x131   :  { %v328_v1 = vadd.f32 %v644_v63, %v327_v0  ;;  %v340_v2 = vpop.f32.mrf.mxu3 }
 0x133   :  { %v341_v3 = vadd.f32 %v340_v2, %v328_v1 }
 0x135   :  { %v344_v4 = vmax.f32 %v341_v3, 0.0 }
 0x137   :  { %v345_v5 = vpack.c.bf16 %v344_v4, %v344_v4 }
 0x138   :  { %v329_v6 = vpop.f32.mrf.mxu2 }
 0x139   :  { %v342_v7 = vpop.f32.mrf.mxu3  ;;  %422 = vmatmul.bf16.vlgmr.msrb.gmra.mxu0 %v345_v5 }
 0x1b6   :  { %v423_v11 = vpop.f32.mrf.mxu0 }
 0x1b7   :  { %v424_v12 = vadd.f32 %v645_v10, %v423_v11 }
 0x1b9   :  { %v427_v13 = vmax.f32 %v424_v12, 0.0 }
 0x1bb   :  { %v429_v14 = vpack.c.bf16 %v427_v13, %v427_v13 }
 0x1bd   :  { %444 = vmatpush.bf16.xpose.msrb.mxu1 %v429_v14 }
 0x1be   :  { %v425_v15 = vpop.f32.mrf.mxu0 }
 0x1c4   :  { %445 = vmatmul.bf16.vlgmr.msrb.gmra.mxu1 %v428_v16 }
 0x241   :  { %v446_v19 = vpop.f32.mrf.mxu1 }
 0x242   :  { %v447_v20 = vadd.f32 %v446_v19, %v436_v18 }
 0x244   :  { %451 = vst.msk [vmem:[#allocation11] sm:$0x1] %vm450_vm1, %v447_v20 }
 0x245   :  { %462 = dma.vmem_to_hbm [thread:$0]  %s458_s16, 16, %s460_s19, [#allocation5]  }
 0x249   :  { %v448_v21 = vpop.f32.mrf.mxu1 }
 0x24a   :  { %772 = dma.done.wait [#allocation5], 16  }
 0x24b   :  { %773 = vsyncadd [#allocation5], 4294967280 }
 0x24c   :  { %467 = vsyncpa [#allocation4], 1 }
 0x24d   :  { %468 = vsyncpa [#allocation7], 1 }
 0x24e   :  { %469 = vsyncpa [#allocation10], 1 }
 0x24f   :  { %470 = vsyncpa [#allocation5], 1 }

</bundles_post_ra>
